<compile_context>
chip_gen: v6e
topology: v6e:2x2x1
jax: 0.10.0
libtpu: 0.0.40
codegen_flags: <defaults>
</compile_context>

<pallas_src>
import functools

import jax
import jax.numpy as jnp
from jax.experimental import pallas as pl
from jax.experimental.pallas import tpu as pltpu

IN_DIM = 100
HID_DIM = 128
OUT_DIM = 784


def _round_up(x, m):
    return (x + m - 1) // m * m


def _bf16_tanh_ok():
    # bf16 EUP exists on v6e/v7x; keep f32 tanh on v5e and older (and on
    # anything we can't identify).
    try:
        kind = jax.devices()[0].device_kind.lower()
    except Exception:
        return False
    return not any(tag in kind for tag in ("v2", "v3", "v4", "v5"))


def _pick_tile(batch, tile_b):
    # >= 4 grid steps at large batch (megacore sharding on v7x), 256-row floor
    # (per-step overhead), never larger than tile_b or the 8-rounded batch,
    # and always a multiple of 8 to satisfy the (8,128) block constraint.
    tb = _round_up(pl.cdiv(batch, 4), 8)
    tb = min(max(tb, 256), tile_b)
    tb = min(tb, _round_up(batch, 8))
    return max(tb, 8)


def generator_kernel(x_ref, w1_ref, b1_ref, w2_ref, b2_ref, o_ref, *, tanh_dtype):
    # x tile arrives as f32 straight from HBM; cast to bf16 for the MXU.
    x = x_ref[...].astype(jnp.bfloat16)                       # (tb, 100)
    h = jnp.dot(x, w1_ref[...],
                preferred_element_type=jnp.float32)           # (tb, 128) f32
    h = jnp.maximum(h + b1_ref[...], 0.0)                     # bias + ReLU (f32)
    y = jnp.dot(h.astype(jnp.bfloat16), w2_ref[...],
                preferred_element_type=jnp.float32)           # (tb, 784) f32
    y = y + b2_ref[...]
    # tanh in bf16 on chips with a bf16 EUP, f32 otherwise; store bf16.
    o_ref[...] = jnp.tanh(y.astype(tanh_dtype)).astype(o_ref.dtype)


def prepare_params(w1, b1, w2, b2):
    """One-time parameter prep (hoisted out of the forward path).

    w1: (100,128), b1: (128,), w2: (128,784), b2: (784,)  -- all f32,
    weights stored (in, out) so the kernel computes x @ W.
    """
    return (
        w1.astype(jnp.bfloat16),                     # (100, 128) bf16
        b1.reshape(1, HID_DIM).astype(jnp.float32),  # (1, 128)   f32
        w2.astype(jnp.bfloat16),                     # (128, 784) bf16
        b2.reshape(1, OUT_DIM).astype(jnp.float32),  # (1, 784)   f32
    )


def generator_forward(x, params, *, tile_b=2048):
    """Forward pass: Linear(100,128) -> ReLU -> Linear(128,784) -> Tanh.

    x: (B, 100) f32, params from prepare_params().  Returns (B, 784) bf16
    (tanh output is in [-1,1]; cast to f32 in the caller if required).
    """
    w1p, b1p, w2p, b2p = params
    batch = x.shape[0]
    tb = _pick_tile(batch, tile_b)
    grid = (pl.cdiv(batch, tb),)

    flops = 2 * batch * (IN_DIM * HID_DIM + HID_DIM * OUT_DIM)
    bytes_accessed = (batch * IN_DIM * 4            # x read (f32)
                      + w1p.size * 2 + w2p.size * 2  # weights (bf16)
                      + b1p.size * 4 + b2p.size * 4  # biases (f32)
                      + batch * OUT_DIM * 2)         # output write (bf16)
    cost = pl.CostEstimate(flops=flops,
                           transcendentals=batch * OUT_DIM,
                           bytes_accessed=bytes_accessed)

    tanh_dtype = jnp.bfloat16 if _bf16_tanh_ok() else jnp.float32
    kernel = functools.partial(generator_kernel, tanh_dtype=tanh_dtype)

    # NOTE: with grid = cdiv(batch, tb) the last partial x block contains
    # padding rows; that is safe here because there is no cross-row reduction
    # and the corresponding output rows are never written.
    out = pl.pallas_call(
        kernel,
        out_shape=jax.ShapeDtypeStruct((batch, OUT_DIM), jnp.bfloat16),
        grid=grid,
        in_specs=[
            pl.BlockSpec((tb, IN_DIM), lambda i: (i, 0)),         # x tile (f32)
            pl.BlockSpec((IN_DIM, HID_DIM), lambda i: (0, 0)),    # w1 resident
            pl.BlockSpec((1, HID_DIM), lambda i: (0, 0)),         # b1 resident
            pl.BlockSpec((HID_DIM, OUT_DIM), lambda i: (0, 0)),   # w2 resident
            pl.BlockSpec((1, OUT_DIM), lambda i: (0, 0)),         # b2 resident
        ],
        out_specs=pl.BlockSpec((tb, OUT_DIM), lambda i: (i, 0)),  # unpadded bf16
        compiler_params=pltpu.CompilerParams(
            dimension_semantics=("parallel",),   # batch shards across TCs (v7x)
            vmem_limit_bytes=48 * 1024 * 1024,   # fits v7x 64 MiB; plenty for tb=2048
        ),
        cost_estimate=cost,
    )(x, w1p, b1p, w2p, b2p)

    return out


def init_params(key):
    """Deterministic init mirroring PyTorch nn.Linear default:
    U(-1/sqrt(fan_in), 1/sqrt(fan_in)) for both weight and bias."""
    k1, k2, k3, k4 = jax.random.split(key, 4)
    bound1 = 1.0 / jnp.sqrt(jnp.float32(IN_DIM))
    bound2 = 1.0 / jnp.sqrt(jnp.float32(HID_DIM))
    # Stored as (in, out) so the kernel does x @ W.
    w1 = jax.random.uniform(k1, (IN_DIM, HID_DIM), jnp.float32, -bound1, bound1)
    b1 = jax.random.uniform(k2, (HID_DIM,), jnp.float32, -bound1, bound1)
    w2 = jax.random.uniform(k3, (HID_DIM, OUT_DIM), jnp.float32, -bound2, bound2)
    b2 = jax.random.uniform(k4, (OUT_DIM,), jnp.float32, -bound2, bound2)
    return w1, b1, w2, b2


if __name__ == "__main__":
    key = jax.random.PRNGKey(0)
    k_x, k_p = jax.random.split(key)

    batch = 8
    x = jax.random.normal(k_x, (batch, IN_DIM), jnp.float32)  # latent vectors
    w1, b1, w2, b2 = init_params(k_p)
    params = prepare_params(w1, b1, w2, b2)                    # one-time prep

    out = generator_forward(x, params)
    out = jax.block_until_ready(out)

    # Reference in plain f32 JAX (same math). Kernel uses bf16 matmul inputs
    # and a bf16 output store, so tolerance is loosened accordingly.
    ref = jnp.tanh(jnp.maximum(x @ w1 + b1[None, :], 0.0) @ w2 + b2[None, :])
    assert out.shape == (batch, OUT_DIM)
    assert out.dtype == jnp.bfloat16
    err = float(jnp.max(jnp.abs(out.astype(jnp.float32) - ref)))
    assert jnp.allclose(out.astype(jnp.float32), ref, atol=4e-2, rtol=4e-2), err

    print("KERNEL_OK")
</pallas_src>

<mosaic_0001>
module attributes {stable_mosaic.version = 11 : i64} {
  func.func @generator_kernel(%arg0: i32, %arg1: memref<8x100xf32, #tpu.memory_space<vmem>>, %arg2: memref<100x128xbf16, #tpu.memory_space<vmem>>, %arg3: memref<1x128xf32, #tpu.memory_space<vmem>>, %arg4: memref<128x784xbf16, #tpu.memory_space<vmem>>, %arg5: memref<1x784xf32, #tpu.memory_space<vmem>>, %arg6: memref<8x784xbf16, #tpu.memory_space<vmem>>) attributes {dimension_semantics = [#tpu.dimension_semantics<parallel>], iteration_bounds = array<i64: 1>, scalar_prefetch = 0 : i64, scratch_operands = 0 : i64, tpu.core_type = #tpu.core_type<tc>, window_params = [{transform_indices = @transform_0, window_bounds = array<i64: 8, 100>}, {pipeline_mode = #tpu.pipeline_mode<synchronous>, transform_indices = @transform_1, window_bounds = array<i64: 100, 128>}, {pipeline_mode = #tpu.pipeline_mode<synchronous>, transform_indices = @transform_2, window_bounds = array<i64: 1, 128>}, {pipeline_mode = #tpu.pipeline_mode<synchronous>, transform_indices = @transform_3, window_bounds = array<i64: 128, 784>}, {pipeline_mode = #tpu.pipeline_mode<synchronous>, transform_indices = @transform_4, window_bounds = array<i64: 1, 784>}, {transform_indices = @transform_5, window_bounds = array<i64: 8, 784>}]} {
    %c0 = arith.constant 0 : index
    %c0_0 = arith.constant 0 : index
    %0 = vector.load %arg1[%c0, %c0_0] : memref<8x100xf32, #tpu.memory_space<vmem>>, vector<8x100xf32>
    %1 = arith.truncf %0 : vector<8x100xf32> to vector<8x100xbf16>
    %c0_1 = arith.constant 0 : index
    %c0_2 = arith.constant 0 : index
    %2 = vector.load %arg2[%c0_1, %c0_2] : memref<100x128xbf16, #tpu.memory_space<vmem>>, vector<100x128xbf16>
    %cst = arith.constant dense<0.000000e+00> : vector<8x128xf32>
    %3 = tpu.matmul %1, %2, %cst {dimension_numbers = #tpu.dot_dimension_numbers<[1], [0], [0], [1], [0, 0, 1, 1], [], []>} : vector<8x100xbf16>, vector<100x128xbf16>, vector<8x128xf32> -> vector<8x128xf32>
    %c0_3 = arith.constant 0 : index
    %c0_4 = arith.constant 0 : index
    %4 = vector.load %arg3[%c0_3, %c0_4] : memref<1x128xf32, #tpu.memory_space<vmem>>, vector<1x128xf32>
    %5 = vector.broadcast %4 : vector<1x128xf32> to vector<8x128xf32>
    %6 = arith.addf %3, %5 : vector<8x128xf32>
    %cst_5 = arith.constant 0.000000e+00 : f32
    %7 = vector.broadcast %cst_5 : f32 to vector<8x128xf32>
    %8 = arith.maximumf %6, %7 : vector<8x128xf32>
    %9 = arith.truncf %8 : vector<8x128xf32> to vector<8x128xbf16>
    %c0_6 = arith.constant 0 : index
    %c0_7 = arith.constant 0 : index
    %10 = vector.load %arg4[%c0_6, %c0_7] : memref<128x784xbf16, #tpu.memory_space<vmem>>, vector<128x784xbf16>
    %cst_8 = arith.constant dense<0.000000e+00> : vector<8x784xf32>
    %11 = tpu.matmul %9, %10, %cst_8 {dimension_numbers = #tpu.dot_dimension_numbers<[1], [0], [0], [1], [0, 0, 1, 1], [], []>} : vector<8x128xbf16>, vector<128x784xbf16>, vector<8x784xf32> -> vector<8x784xf32>
    %c0_9 = arith.constant 0 : index
    %c0_10 = arith.constant 0 : index
    %12 = vector.load %arg5[%c0_9, %c0_10] : memref<1x784xf32, #tpu.memory_space<vmem>>, vector<1x784xf32>
    %13 = vector.broadcast %12 : vector<1x784xf32> to vector<8x784xf32>
    %14 = arith.addf %11, %13 : vector<8x784xf32>
    %15 = arith.truncf %14 : vector<8x784xf32> to vector<8x784xbf16>
    %16 = math.tanh %15 : vector<8x784xbf16>
    %c0_11 = arith.constant 0 : index
    %c0_12 = arith.constant 0 : index
    %17 = vector.load %arg6[%c0_11, %c0_12] : memref<8x784xbf16, #tpu.memory_space<vmem>>, vector<8x784xbf16>
    tpu.vector_store %arg6[%c0_11, %c0_12], %16 {strides = array<i32>} : memref<8x784xbf16, #tpu.memory_space<vmem>>, vector<8x784xbf16>,
    return
  }
  func.func @transform_0(%arg0: i32) -> (i32, i32) {
    %c0_i32 = arith.constant 0 : i32
    %c0_i32_0 = arith.constant 0 : i32
    return %arg0, %c0_i32 : i32, i32
  }
  func.func @transform_1(%arg0: i32) -> (i32, i32) {
    %c0_i32 = arith.constant 0 : i32
    %c0_i32_0 = arith.constant 0 : i32
    %c0_i32_1 = arith.constant 0 : i32
    return %c0_i32, %c0_i32_0 : i32, i32
  }
  func.func @transform_2(%arg0: i32) -> (i32, i32) {
    %c0_i32 = arith.constant 0 : i32
    %c0_i32_0 = arith.constant 0 : i32
    %c0_i32_1 = arith.constant 0 : i32
    return %c0_i32, %c0_i32_0 : i32, i32
  }
  func.func @transform_3(%arg0: i32) -> (i32, i32) {
    %c0_i32 = arith.constant 0 : i32
    %c0_i32_0 = arith.constant 0 : i32
    %c0_i32_1 = arith.constant 0 : i32
    return %c0_i32, %c0_i32_0 : i32, i32
  }
  func.func @transform_4(%arg0: i32) -> (i32, i32) {
    %c0_i32 = arith.constant 0 : i32
    %c0_i32_0 = arith.constant 0 : i32
    %c0_i32_1 = arith.constant 0 : i32
    return %c0_i32, %c0_i32_0 : i32, i32
  }
  func.func @transform_5(%arg0: i32) -> (i32, i32) {
    %c0_i32 = arith.constant 0 : i32
    %c0_i32_0 = arith.constant 0 : i32
    return %arg0, %c0_i32 : i32, i32
  }
}

</mosaic_0001>

<bundles_post_ra>
// kernel: tpu_custom_call.1
= control target key start
LH: loop header
LB: loop body
LE: loop exit
PB: predicated region body
PF: predicated region fallthrough
CT: control target
= control target key end

     0   :  { %v991_v1 = vmov 0.0   ;;  %vm87_vm0 = vcmask 1041408   ;;  %vm992_vm1 = vmmov 0   ;;  %vm83_vm2 = vcmask 818176   ;;  %s1245_s0 = inlined_call_operand.vmem [shape: f32[8,100], index: 0, kind: input, shape index: {}]   ;;  %s1246_s1 = inlined_call_operand.vmem [shape: bf16[100,128], index: 1, kind: input, shape index: {}]   ;;  %s1247_s2 = inlined_call_operand.vmem [shape: f32[1,128], index: 2, kind: input, shape index: {}]   ;;  %s1248_s3 = inlined_call_operand.vmem [shape: bf16[128,784], index: 3, kind: input, shape index: {}]   ;;  %s1249_s4 = inlined_call_operand.vmem [shape: f32[1,784], index: 4, kind: input, shape index: {}]   ;;  %s1250_s5 = inlined_call_operand.hbm [shape: bf16[8,784], index: 5, kind: output, shape index: {}]  }
   0x1   :  { %v868_v0 = vld [vmem:[%s1246_s1 + $0x30] ss:$0 sps:$4 sm:$0x33]   ;;  %826 = vmatprep.subr.bf16.mxu0 %v991_v1  ;;  %v869_v3 = vld [vmem:[%s1246_s1 + $0x28] sm:$0xff]   ;;  %840 = vmatprep.mubr.msk.bf16.mxu0 %vm992_vm1, %v991_v1  ;;  %v870_v4 = vld [vmem:[%s1246_s1 + $0x20] sm:$0xff]  }
   0x2   :  { %v89_v2 = vsel %vm87_vm0, %v868_v0, 0  ;;  %v875_v5 = vld [vmem:[%s1248_s3 + $0x18c] ss:$28 sps:$4 sm:$0xff]   ;;  %v881_v7 = vld [vmem:[%s1248_s3 + $0x154] ss:$28 sps:$4 sm:$0xff]   ;;  %v871_v8 = vld [vmem:[%s1246_s1 + $0x18] sm:$0xff]  }
   0x3   :  { %827 = vmatpush3.bf16.msra.mxu0 %v89_v2  ;;  %v880_v6 = vld [vmem:[%s1248_s3 + $0x188] ss:$28 sps:$4 sm:$0xff]   ;;  %522 = vmatprep.subr.bf16.mxu1 %v875_v5  ;;  %v886_v9 = vld [vmem:[%s1248_s3 + $0x150] ss:$28 sps:$4 sm:$0xff]   ;;  %v887_v10 = vld [vmem:[%s1248_s3 + $0x11c] ss:$28 sps:$4 sm:$0xff]  }
   0x4   :  { %828 = vmatprep.subr.bf16.mxu0 %v991_v1  ;;  %523 = vmatpush1.bf16.msra.mxu1 %v880_v6  ;;  %v872_v11 = vld [vmem:[%s1246_s1 + $0x10] sm:$0xff]   ;;  %v893_v13 = vld [vmem:[%s1248_s3 + $0xe4] ss:$28 sps:$4 sm:$0xff]   ;;  %v873_v14 = vld [vmem:[%s1246_s1 + $0x8] sm:$0xff]  }
   0x5   :  { %524 = vmatprep.subr.bf16.mxu1 %v881_v7  ;;  %v892_v12 = vld [vmem:[%s1248_s3 + $0x118] ss:$28 sps:$4 sm:$0xff]   ;;  %v898_v15 = vld [vmem:[%s1248_s3 + $0xe0] ss:$28 sps:$4 sm:$0xff]   ;;  %v899_v16 = vld [vmem:[%s1248_s3 + $0xac] ss:$28 sps:$4 sm:$0xff]  }
   0x6   :  { %v874_v17 = vld [vmem:[%s1246_s1] sm:$0xff]   ;;  %v879_v19 = vld [vmem:[%s1248_s3 + $0x194] ss:$28 sps:$4 sm:$0xff]   ;;  %v885_v25 = vld [vmem:[%s1248_s3 + $0x15c] ss:$28 sps:$4 sm:$0xff]  }
   0x7   :  { %829 = vmatpush3.bf16.msra.mxu0 %v869_v3  ;;  %v22_v18 = vld [vmem:[%s1245_s0] sm:$0xff]  ;;  %v905_v21 = vld [vmem:[%s1248_s3 + $0x74] ss:$28 sps:$4 sm:$0xff]   ;;  %v911_v26 = vld [vmem:[%s1248_s3 + $0x3c] ss:$28 sps:$4 sm:$0xff]  }
   0x8   :  { %830 = vmatprep.subr.bf16.mxu0 %v991_v1  ;;  %525 = vmatpush1.bf16.msra.mxu1 %v886_v9  ;;  %v904_v20 = vld [vmem:[%s1248_s3 + $0xa8] ss:$28 sps:$4 sm:$0xff]   ;;  %v877_v22 = vld [vmem:[%s1248_s3 + $0x190] ss:$28 sps:$4 sm:$0xff]   ;;  %v23_v24 = vpack.c.bf16 %v22_v18, %v22_v18  ;;  %v883_v27 = vld [vmem:[%s1248_s3 + $0x158] ss:$28 sps:$4 sm:$0xff]  }
   0x9   :  { %526 = vmatprep.subr.bf16.mxu1 %v887_v10  ;;  %v910_v23 = vld [vmem:[%s1248_s3 + $0x70] ss:$28 sps:$4 sm:$0xff]   ;;  %v916_v28 = vld [vmem:[%s1248_s3 + $0x38] ss:$28 sps:$4 sm:$0xff]   ;;  %v891_v29 = vld [vmem:[%s1248_s3 + $0x124] ss:$28 sps:$4 sm:$0xff]  }
   0xa   :  { %v889_v30 = vld [vmem:[%s1248_s3 + $0x120] ss:$28 sps:$4 sm:$0xff]   ;;  %v897_v31 = vld [vmem:[%s1248_s3 + $0xec] ss:$28 sps:$4 sm:$0xff]  }
   0xb   :  { %831 = vmatpush3.bf16.msra.mxu0 %v870_v4 }
   0xc   :  { %832 = vmatprep.subr.bf16.mxu0 %v991_v1  ;;  %527 = vmatpush1.bf16.msra.mxu1 %v892_v12 }
   0xd   :  { %528 = vmatprep.subr.bf16.mxu1 %v893_v13 }
   0xf   :  { %833 = vmatpush3.bf16.msra.mxu0 %v871_v8 }
  0x10   :  { %834 = vmatprep.subr.bf16.mxu0 %v991_v1  ;;  %529 = vmatpush1.bf16.msra.mxu1 %v898_v15 }
  0x11   :  { %530 = vmatprep.subr.bf16.mxu1 %v899_v16 }
  0x13   :  { %835 = vmatpush3.bf16.msra.mxu0 %v872_v11 }
  0x14   :  { %836 = vmatprep.subr.bf16.mxu0 %v991_v1  ;;  %531 = vmatpush1.bf16.msra.mxu1 %v904_v20 }
  0x15   :  { %532 = vmatprep.subr.bf16.mxu1 %v905_v21 }
  0x17   :  { %837 = vmatpush3.bf16.msra.mxu0 %v873_v14 }
  0x18   :  { %838 = vmatprep.subr.bf16.mxu0 %v991_v1  ;;  %533 = vmatpush1.bf16.msra.mxu1 %v910_v23 }
  0x19   :  { %534 = vmatprep.subr.bf16.mxu1 %v911_v26 }
  0x1b   :  { %839 = vmatpush3.bf16.msra.mxu0 %v874_v17 }
  0x1c   :  { %563 = vmatprep.subr.bf16.mxu0 %v879_v19  ;;  %535 = vmatpush1.bf16.msra.mxu1 %v916_v28 }
  0x1e   :  { %841 = vmatmul.mubr.msk.bf16.vlgmr.msra.gmra.mxu0 %vm83_vm2, %v23_v24 }
  0x1f   :  { %564 = vmatpush1.bf16.msra.mxu0 %v877_v22 }
  0x20   :  { %565 = vmatprep.subr.bf16.mxu0 %v885_v25 }
  0x23   :  { %566 = vmatpush1.bf16.msra.mxu0 %v883_v27 }
  0x24   :  { %567 = vmatprep.subr.bf16.mxu0 %v891_v29 }
  0x25   :  { %10 = vsyncpa [#allocation3], 0  ;;  %v895_v32 = vld [vmem:[%s1248_s3 + $0xe8] ss:$28 sps:$4 sm:$0xff]   ;;  %v903_v33 = vld [vmem:[%s1248_s3 + $0xb4] ss:$28 sps:$4 sm:$0xff]   ;;  %v199_v13 = vlaneseq }
  0x26   :  { %v901_v34 = vld [vmem:[%s1248_s3 + $0xb0] ss:$28 sps:$4 sm:$0xff]   ;;  %v909_v35 = vld [vmem:[%s1248_s3 + $0x7c] ss:$28 sps:$4 sm:$0xff]   ;;  %v915_v37 = vld [vmem:[%s1248_s3 + $0x44] ss:$28 sps:$4 sm:$0xff]  }
  0x27   :  { %568 = vmatpush1.bf16.msra.mxu0 %v889_v30  ;;  %v907_v36 = vld [vmem:[%s1248_s3 + $0x78] ss:$28 sps:$4 sm:$0xff]   ;;  %v913_v38 = vld [vmem:[%s1248_s3 + $0x40] ss:$28 sps:$4 sm:$0xff]   ;;  %v921_v40 = vld [vmem:[%s1248_s3 + $0xc] ss:$28 sps:$4 sm:$0xff]  }
  0x28   :  { %569 = vmatprep.subr.bf16.mxu0 %v897_v31  ;;  %v917_v39 = vld [vmem:[%s1248_s3 + $0x4] ss:$28 sps:$4 sm:$0xff]   ;;  %v925_v43 = vld [vmem:[%s1248_s3 + $0x19c] ss:$28 sps:$4 sm:$0xff]   ;;  %v993_v44 = vmov 0   ;;  %v200_v14 = vshrl.u32 %v199_v13, 7 }
  0x29   :  { %v919_v41 = vld [vmem:[%s1248_s3 + $0x8] ss:$28 sps:$4 sm:$0xff]   ;;  %v922_v42 = vld [vmem:[%s1248_s3] ss:$28 sps:$4 sm:$0xff]   ;;  %536 = vmatprep.subr.bf16.mxu1 %v917_v39  ;;  %554 = vmatprep.mubr.bf16.mxu1 %v993_v44  ;;  %v923_v51 = vld [vmem:[%s1248_s3 + $0x198] ss:$28 sps:$4 sm:$0xff]  }
  0x2a   :  { %537 = vmatpush1.bf16.msra.mxu1 %v922_v42  ;;  %595 = vmatprep.mubr.bf16.mxu0 %v993_v44  ;;  %v740_v45 = vld [vmem:[%s1247_s2] ss:$0 sm:$0xff]  ;;  %v930_v57 = vld [vmem:[%s1248_s3 + $0x168] ss:$28 sps:$4 sm:$0xff]   ;;  %v934_v60 = vld [vmem:[%s1248_s3 + $0x130] ss:$28 sps:$4 sm:$0xff]  }
  0x2b   :  { %570 = vmatpush1.bf16.msra.mxu0 %v895_v32  ;;  %604 = vmatprep.subr.bf16.mxu1 %v925_v43  ;;  %v926_v52 = vld [vmem:[%s1248_s3 + $0x1a0] ss:$28 sps:$4 sm:$0xff]   ;;  %v933_v58 = vld [vmem:[%s1248_s3 + $0x12c] ss:$28 sps:$4 sm:$0xff]   ;;  %v937_v61 = vld [vmem:[%s1248_s3 + $0xf4] ss:$28 sps:$4 sm:$0xff]  }
  0x2c   :  { %571 = vmatprep.subr.bf16.mxu0 %v903_v33  ;;  %v929_v54 = vld [vmem:[%s1248_s3 + $0x164] ss:$28 sps:$4 sm:$0xff]   ;;  %v935_v62 = vld [vmem:[%s1248_s3 + $0xf0] ss:$28 sps:$4 sm:$0xff]   ;;  %v938_v63 = vld [vmem:[%s1248_s3 + $0xf8] ss:$28 sps:$4 sm:$0xff]  }
  0x2d   :  { %v927_v56 = vld [vmem:[%s1248_s3 + $0x160] ss:$28 sps:$4 sm:$0xff]   ;;  %v931_v59 = vld [vmem:[%s1248_s3 + $0x128] ss:$28 sps:$4 sm:$0xff]   ;;  %v939_v2 = vld [vmem:[%s1248_s3 + $0xb8] ss:$28 sps:$4 sm:$0xff]  }
  0x2e   :  { %v941_v0 = vld [vmem:[%s1248_s3 + $0xbc] ss:$28 sps:$4 sm:$0xff]   ;;  %v945_v4 = vld [vmem:[%s1248_s3 + $0x84] ss:$28 sps:$4 sm:$0xff]   ;;  %v949_v7 = vld [vmem:[%s1248_s3 + $0x4c] ss:$28 sps:$4 sm:$0xff]  }
  0x2f   :  { %572 = vmatpush1.bf16.msra.mxu0 %v901_v34  ;;  %v942_v3 = vld [vmem:[%s1248_s3 + $0xc0] ss:$28 sps:$4 sm:$0xff]   ;;  %v946_v6 = vld [vmem:[%s1248_s3 + $0x88] ss:$28 sps:$4 sm:$0xff]   ;;  %v950_v9 = vld [vmem:[%s1248_s3 + $0x50] ss:$28 sps:$4 sm:$0xff]  }
  0x30   :  { %573 = vmatprep.subr.bf16.mxu0 %v909_v35  ;;  %v943_v5 = vld [vmem:[%s1248_s3 + $0x80] ss:$28 sps:$4 sm:$0xff]   ;;  %v947_v8 = vld [vmem:[%s1248_s3 + $0x48] ss:$28 sps:$4 sm:$0xff]   ;;  %v953_v10 = vld [vmem:[%s1248_s3 + $0x14] ss:$28 sps:$4 sm:$0xff]  }
  0x31   :  { %v951_v11 = vld [vmem:[%s1248_s3 + $0x10] ss:$28 sps:$4 sm:$0xff]   ;;  %v954_v12 = vld [vmem:[%s1248_s3 + $0x18] ss:$28 sps:$4 sm:$0xff]   ;;  %v201_v15 = vsub.s32 0, %v200_v14  ;;  %v209_v16 = vsub.s32 2, %v200_v14 }
  0x32   :  { %v197_v17 = vld [vmem:[%s1249_s4] sm:$0x7f]  ;;  %v205_v18 = vsub.s32 1, %v200_v14  ;;  %v213_v19 = vsub.s32 3, %v200_v14  ;;  %s994_s3 = smov [#allocation2]   ;;  %vm724_vm3 = vcmask 125952  }
  0x33   :  { %574 = vmatpush1.bf16.msra.mxu0 %v907_v36  ;;  %v202_v20 = vrot.slane %v197_v17, %v201_v15  ;;  %v210_v21 = vrot.slane %v197_v17, %v209_v16  ;;  %s732_s4 = sshll.u32 %s994_s3, 4  ;;  %s733_s4 = int_to_ptr.vmem [resolvable:$true] %s732_s4 }
  0x34   :  { %575 = vmatprep.subr.bf16.mxu0 %v915_v37  ;;  %v206_v22 = vrot.slane %v197_v17, %v205_v18  ;;  %v214_v23 = vrot.slane %v197_v17, %v213_v19  ;;  %s969_s15 = scalar_lea.vmem %s733_s4, 448  ;;  %p974_p1 = scmp.lt.s32.totalorder %s733_s4, %s733_s4 }
  0x35   :  { %p970_p0 = scmp.ne.s32.totalorder %s733_s4, %s969_s15  ;;  %p975_p2 = scmp.lt.s32.totalorder %s969_s15, %s969_s15 }
  0x37   :  { %576 = vmatpush1.bf16.msra.mxu0 %v913_v38  ;;  %p976_p3 = por %p975_p2, %p974_p1 }
  0x38   :  { %577 = vmatprep.subr.bf16.mxu0 %v921_v40 }
  0x39   :  { %p977_p4 = pnand %p976_p3, %p970_p0 }
  0x3b   :  { %578 = vmatpush1.bf16.msra.mxu0 %v919_v41 }
  0x3c   :  { %844 = vmatprep.subr.bf16.mxu0 %v991_v1 }
  0xde   :  { %v125_v46 = vpop.f32.mrf.mxu0 }
  0xdf   :  { %v126_v47 = vadd.f32 %v740_v45, %v125_v46  ;;  %v217_v45 = vsub.s32 4, %v200_v14  ;;  %v225_v46 = vsub.s32 6, %v200_v14 }
  0xe0   :  { %v842_v48 = vpop.f32.mrf.mxu0 }
  0xe1   :  { %v131_v49 = vmax.f32 %v126_v47, 0.0  ;;  %v221_v47 = vsub.s32 5, %v200_v14  ;;  %v218_v48 = vrot.slane %v197_v17, %v217_v45 }
  0xe2   :  { %v128_v50 = vpop.f32.mrf.mxu0 }
  0xe3   :  { %v132_v53 = vpack.c.bf16 %v131_v49, %v131_v49  ;;  %v226_v49 = vrot.slane %v197_v17, %v225_v46  ;;  %v222_v50 = vrot.slane %v197_v17, %v221_v47 }
  0xe4   :  { %v843_v55 = vpop.f32.mrf.mxu0 }
  0xe5   :  { %555 = vmatmul.mubr.bf16.vlgmr.msra.gmra.mxu1 %v132_v53  ;;  %596 = vmatmul.mubr.bf16.vlgmr.msra.gmra.mxu0 %v132_v53 }
  0xe6   :  { %605 = vmatpush1.bf16.msra.mxu1 %v923_v51  ;;  %845 = vmatpush3.bf16.msra.mxu0 %v926_v52 }
  0xe7   :  { %606 = vmatprep.subr.bf16.mxu1 %v929_v54  ;;  %846 = vmatprep.subr.bf16.mxu0 %v991_v1 }
  0xe8   :  { %636 = vmatprep.mubr.bf16.mxu1 %v993_v44  ;;  %860 = vmatprep.mubr.msk.bf16.mxu0 %vm992_vm1, %v991_v1 }
  0xea   :  { %607 = vmatpush1.bf16.msra.mxu1 %v927_v56  ;;  %847 = vmatpush3.bf16.msra.mxu0 %v930_v57 }
  0xeb   :  { %608 = vmatprep.subr.bf16.mxu1 %v933_v58  ;;  %848 = vmatprep.subr.bf16.mxu0 %v991_v1 }
  0xee   :  { %609 = vmatpush1.bf16.msra.mxu1 %v931_v59  ;;  %849 = vmatpush3.bf16.msra.mxu0 %v934_v60 }
  0xef   :  { %610 = vmatprep.subr.bf16.mxu1 %v937_v61  ;;  %850 = vmatprep.subr.bf16.mxu0 %v991_v1 }
  0xf2   :  { %611 = vmatpush1.bf16.msra.mxu1 %v935_v62  ;;  %851 = vmatpush3.bf16.msra.mxu0 %v938_v63 }
  0xf3   :  { %612 = vmatprep.subr.bf16.mxu1 %v941_v0  ;;  %852 = vmatprep.subr.bf16.mxu0 %v991_v1 }
  0xf6   :  { %613 = vmatpush1.bf16.msra.mxu1 %v939_v2  ;;  %853 = vmatpush3.bf16.msra.mxu0 %v942_v3 }
  0xf7   :  { %614 = vmatprep.subr.bf16.mxu1 %v945_v4  ;;  %854 = vmatprep.subr.bf16.mxu0 %v991_v1 }
  0xfa   :  { %615 = vmatpush1.bf16.msra.mxu1 %v943_v5  ;;  %855 = vmatpush3.bf16.msra.mxu0 %v946_v6 }
  0xfb   :  { %616 = vmatprep.subr.bf16.mxu1 %v949_v7  ;;  %856 = vmatprep.subr.bf16.mxu0 %v991_v1 }
  0xfe   :  { %617 = vmatpush1.bf16.msra.mxu1 %v947_v8  ;;  %857 = vmatpush3.bf16.msra.mxu0 %v950_v9 }
  0xff   :  { %618 = vmatprep.subr.bf16.mxu1 %v953_v10  ;;  %858 = vmatprep.subr.bf16.mxu0 %v991_v1 }
 0x102   :  { %619 = vmatpush1.bf16.msra.mxu1 %v951_v11  ;;  %859 = vmatpush3.bf16.msra.mxu0 %v954_v12 }
 0x105   :  { %637 = vmatmul.mubr.bf16.vlgmr.msra.gmra.mxu1 %v132_v53  ;;  %861 = vmatmul.mubr.bf16.vlgmr.msra.gmra.mxu0 %v132_v53 }
 0x1a5   :  { %v556_v24 = vpop.f32.mrf.mxu1  ;;  %v597_v1 = vpop.f32.mrf.mxu0 }
 0x1a6   :  { %v557_v25 = vadd.f32 %v556_v24, %v202_v20  ;;  %v598_v26 = vadd.f32 %v597_v1, %v210_v21 }
 0x1a7   :  { %v558_v27 = vpop.f32.mrf.mxu1  ;;  %v599_v28 = vpop.f32.mrf.mxu0 }
 0x1a8   :  { %v685_v29 = vpack.c.bf16 %v557_v25, %v557_v25  ;;  %v687_v30 = vpack.c.bf16 %v598_v26, %v598_v26  ;;  %v559_v31 = vadd.f32 %v558_v27, %v206_v22  ;;  %v600_v32 = vadd.f32 %v599_v28, %v214_v23 }
 0x1a9   :  { %v560_v33 = vpop.f32.mrf.mxu1  ;;  %v601_v34 = vpop.f32.mrf.mxu0 }
 0x1aa   :  { %955 = vtanh.bf16 %v685_v29  ;;  %v686_v35 = vpack.c.bf16 %v559_v31, %v559_v31  ;;  %v688_v36 = vpack.c.bf16 %v600_v32, %v600_v32 }
 0x1ab   :  { %957 = vtanh.bf16 %v687_v30  ;;  %v561_v37 = vpop.f32.mrf.mxu1  ;;  %v602_v38 = vpop.f32.mrf.mxu0 }
 0x1ac   :  { %959 = vtanh.bf16 %v686_v35 }
 0x1ad   :  { %961 = vtanh.bf16 %v688_v36 }
 0x1b8   :  { %v956_v39 = vpop.eup %955 }
 0x1b9   :  { %v958_v40 = vpop.eup %957 }
 0x1ba   :  { %v960_v41 = vpop.eup %959 }
 0x1bb   :  { %v962_v42 = vpop.eup %961  ;;  %v805_v43 = vcombine.low %v956_v39, %v960_v41 }
 0x1bc   :  { %v806_v44 = vcombine.low %v958_v40, %v962_v42 }
 0x1bd   :  { %721 = vst [vmem:[#allocation2] sm:$0xff] %v805_v43 }
 0x1be   :  { %722 = vst [vmem:[#allocation2 + $0x8] sm:$0xff] %v806_v44 }
 0x1c5   :  { %v638_v51 = vpop.f32.mrf.mxu1  ;;  %v679_v52 = vpop.f32.mrf.mxu0 }
 0x1c6   :  { %v639_v53 = vadd.f32 %v638_v51, %v218_v48  ;;  %v680_v54 = vadd.f32 %v679_v52, %v226_v49 }
 0x1c7   :  { %v640_v55 = vpop.f32.mrf.mxu1  ;;  %v862_v56 = vpop.f32.mrf.mxu0 }
 0x1c8   :  { %v689_v57 = vpack.c.bf16 %v639_v53, %v639_v53  ;;  %v691_v58 = vpack.c.bf16 %v680_v54, %v680_v54  ;;  %v641_v59 = vadd.f32 %v640_v55, %v222_v50 }
 0x1c9   :  { %v642_v60 = vpop.f32.mrf.mxu1  ;;  %v682_v61 = vpop.f32.mrf.mxu0 }
 0x1ca   :  { %963 = vtanh.bf16 %v689_v57  ;;  %v690_v62 = vpack.c.bf16 %v641_v59, %v641_v59 }
 0x1cb   :  { %965 = vtanh.bf16 %v691_v58  ;;  %v643_v63 = vpop.f32.mrf.mxu1  ;;  %v863_v0 = vpop.f32.mrf.mxu0 }
 0x1cc   :  { %967 = vtanh.bf16 %v690_v62 }
 0x1d8   :  { %v964_v2 = vpop.eup %963 }
 0x1d9   :  { %v966_v3 = vpop.eup %965 }
 0x1da   :  { %v968_v4 = vpop.eup %967  ;;  %v808_v5 = vcombine.low %v966_v3, %v966_v3 }
 0x1db   :  { %v807_v6 = vcombine.low %v964_v2, %v968_v4 }
 0x1dc   :  { %725 = vst.msk [vmem:[#allocation2 + $0x18] sm:$0xf] %vm724_vm3, %v808_v5 }
 0x1dd   :  { %723 = vst [vmem:[#allocation2 + $0x10] sm:$0xff] %v807_v6 }
 0x1de   :  { %980 = shalt.err (!%p977_p4)
}
 0x1df   :  { %735 = dma.vmem_to_hbm [thread:$0]  %s733_s4, 448, %s1250_s5, [#allocation3]  }
 0x1e0   :  { %989 = dma.done.wait [#allocation3], 448  }
 0x1e1   :  { %990 = vsyncadd [#allocation3], 4294966848 }
 0x1e2   :  { %739 = vsyncpa [#allocation3], 1 }

</bundles_post_ra>
